<compile_context>
chip_gen: v5e
topology: v5e:2x2
jax: 0.10.0
libtpu: 0.0.40
codegen_flags: <defaults>
</compile_context>

<pallas_src>
import jax
import jax.numpy as jnp
from jax.experimental import pallas as pl
from jax.experimental.pallas import tpu as pltpu

LANE = 128
MAX_EDGE_TILE = 1024


def _round_up(n, m):
    return ((n + m - 1) // m) * m


def _pick_edge_tile(e):
    """Large tiles to amortize ~0.35us/step overhead, but keep >=2 grid steps
    when the problem is big enough so the 'parallel' axis can use both v7x TCs."""
    ep = _round_up(max(e, 1), 256)
    if ep <= 256:
        return 256
    return max(256, min(MAX_EDGE_TILE, _round_up(ep // 2, 256)))


# ---------------------------------------------------------------------------
# Fused kernel: lin1 (single matmul over the concatenated features) + bias +
# ReLU (f32 epilogue) + lin2, bf16 output.
# ---------------------------------------------------------------------------
def _edge_model_kernel(z_ref, w1_ref, b1_ref, w2_ref, b2_ref, o_ref):
    h = jnp.dot(z_ref[...], w1_ref[...], preferred_element_type=jnp.float32)
    h = jnp.maximum(h + b1_ref[...], 0.0)                 # f32 bias+ReLU (v5e-safe)
    out = jnp.dot(h.astype(w2_ref.dtype), w2_ref[...],
                  preferred_element_type=jnp.float32) + b2_ref[...]
    o_ref[...] = out.astype(o_ref.dtype)


# ---------------------------------------------------------------------------
# Parameters
# ---------------------------------------------------------------------------
def init_edge_model(key, f_x, f_e, f_u, hidden, out_dim):
    """PyTorch-default-like Linear init; weights stored [in, out]."""
    input_dim = 2 * f_x + f_e + f_u
    k1, k2, k3, k4 = jax.random.split(key, 4)
    b1_bound = 1.0 / float(input_dim) ** 0.5
    b2_bound = 1.0 / float(hidden) ** 0.5
    return {
        'w1': jax.random.uniform(k1, (input_dim, hidden), jnp.float32, -b1_bound, b1_bound),
        'b1': jax.random.uniform(k2, (hidden,), jnp.float32, -b1_bound, b1_bound),
        'w2': jax.random.uniform(k3, (hidden, out_dim), jnp.float32, -b2_bound, b2_bound),
        'b2': jax.random.uniform(k4, (out_dim,), jnp.float32, -b2_bound, b2_bound),
        'dims': (f_x, f_e, f_u, hidden, out_dim),
    }


def prepare_params(raw):
    """Zero-pad hidden/output dims to 128 (padded hidden cols: relu(0)=0 and
    meet zero W2 rows -> inert), cast matmul operands to bf16; biases stay f32
    for the f32 epilogue."""
    f_x, f_e, f_u, hidden, out_dim = raw['dims']
    hp = _round_up(hidden, LANE)
    dp = _round_up(out_dim, LANE)
    w1 = jnp.pad(raw['w1'], ((0, 0), (0, hp - hidden))).astype(jnp.bfloat16)
    b1 = jnp.pad(raw['b1'], (0, hp - hidden)).reshape(1, hp).astype(jnp.float32)
    w2 = jnp.pad(raw['w2'], ((0, hp - hidden), (0, dp - out_dim))).astype(jnp.bfloat16)
    b2 = jnp.pad(raw['b2'], (0, dp - out_dim)).reshape(1, dp).astype(jnp.float32)
    return {'w1': w1, 'b1': b1, 'w2': w2, 'b2': b2,
            'dims': (f_x, f_e, f_u, hidden, out_dim)}


# ---------------------------------------------------------------------------
# Forward
# ---------------------------------------------------------------------------
def edge_model_forward(params, x, edge_index, edge_attr, u, batch):
    f_x, f_e, f_u, hidden, out_dim = params['dims']
    input_dim = 2 * f_x + f_e + f_u
    e = edge_attr.shape[0]
    if e == 0:
        return jnp.zeros((0, out_dim), jnp.bfloat16)

    tile = _pick_edge_tile(e)
    ep = _round_up(e, tile)
    pad = ep - e

    # TODO(synk): the row/col/batch gathers stay XLA-side (jnp.take); an
    # in-kernel gather via pl.Element would force 1-row blocks and defeat the
    # large MXU tiles.  The concat is built once as a single bf16 slab so the
    # kernel sees ONE lane-denser input stream instead of four tiny ones.
    row = edge_index[0]
    col = edge_index[1]
    graph = jnp.take(batch, row)                     # batch[row], computed once
    x_bf = x.astype(jnp.bfloat16)
    z = jnp.concatenate(
        [jnp.take(x_bf, row, axis=0),
         jnp.take(x_bf, col, axis=0),
         edge_attr.astype(jnp.bfloat16),
         jnp.take(u.astype(jnp.bfloat16), graph, axis=0)],
        axis=1)
    z = jnp.pad(z, ((0, pad), (0, 0)))               # pad rows once; sliced off below

    hp = params['w1'].shape[1]
    dp = params['w2'].shape[1]

    flops = 2 * ep * (input_dim * hp + hp * dp)
    bytes_accessed = (ep * input_dim * 2 + ep * dp * 2            # z read + out write (bf16)
                      + (input_dim * hp + hp * dp) * 2            # weights (bf16)
                      + (hp + dp) * 4)                            # biases (f32)

    out = pl.pallas_call(
        _edge_model_kernel,
        out_shape=jax.ShapeDtypeStruct((ep, dp), jnp.bfloat16),
        grid=(ep // tile,),
        in_specs=[
            pl.BlockSpec((tile, input_dim), lambda i: (i, 0)),    # row-tiled activations
            pl.BlockSpec((input_dim, hp), lambda i: (0, 0)),      # VMEM-resident weights
            pl.BlockSpec((1, hp), lambda i: (0, 0)),
            pl.BlockSpec((hp, dp), lambda i: (0, 0)),
            pl.BlockSpec((1, dp), lambda i: (0, 0)),
        ],
        out_specs=pl.BlockSpec((tile, dp), lambda i: (i, 0)),
        compiler_params=pltpu.CompilerParams(
            dimension_semantics=("parallel",),   # independent edge tiles -> megacore
            vmem_limit_bytes=32 << 20,           # explicit budget, valid on v5e/v6e/v7x
        ),
        cost_estimate=pl.CostEstimate(flops=flops, transcendentals=0,
                                      bytes_accessed=bytes_accessed),
    )(z, params['w1'], params['b1'], params['w2'], params['b2'])
    return out[:e, :out_dim]


# ---------------------------------------------------------------------------
# Pure-JAX reference (mirrors the kernel's bf16-in / f32-accum / bf16-out path)
# ---------------------------------------------------------------------------
def edge_model_reference(raw, x, edge_index, edge_attr, u, batch):
    def bf(v):
        return v.astype(jnp.bfloat16).astype(jnp.float32)
    row, col = edge_index[0], edge_index[1]
    z = jnp.concatenate([x[row], x[col], edge_attr, u[batch[row]]], axis=1)
    h = jnp.dot(bf(z), bf(raw['w1']), preferred_element_type=jnp.float32) + raw['b1']
    h = jnp.maximum(h, 0.0)
    out = jnp.dot(bf(h), bf(raw['w2']), preferred_element_type=jnp.float32) + raw['b2']
    return out.astype(jnp.bfloat16).astype(jnp.float32)


if __name__ == "__main__":
    key = jax.random.PRNGKey(0)

    # Small shapes consistent with EdgeModel_ml2 inside a graph meta-layer.
    B, N, E = 2, 8, 16
    F_X, F_E, F_U = 16, 8, 4               # node / edge / global feature widths
    HIDDEN, OUT_DIM = 32, 32               # input_dim = 2*16 + 8 + 4 = 44

    k1, k2, k3, kp = jax.random.split(key, 4)
    x = jax.random.normal(k1, (N, F_X), jnp.float32)
    edge_attr = jax.random.normal(k2, (E, F_E), jnp.float32)
    u = jax.random.normal(k3, (B, F_U), jnp.float32)

    # nodes 0..3 -> graph 0, nodes 4..7 -> graph 1; edges stay within graphs
    batch = jnp.array([0, 0, 0, 0, 1, 1, 1, 1], jnp.int32)
    row = jnp.array([0, 1, 2, 3, 0, 2, 1, 3, 4, 5, 6, 7, 4, 6, 5, 7], jnp.int32)
    col = jnp.array([1, 0, 3, 2, 2, 0, 3, 1, 5, 4, 7, 6, 6, 4, 7, 5], jnp.int32)
    edge_index = jnp.stack([row, col])

    raw = init_edge_model(kp, F_X, F_E, F_U, HIDDEN, OUT_DIM)
    params = prepare_params(raw)

    out = edge_model_forward(params, x, edge_index, edge_attr, u, batch)
    out = jax.block_until_ready(out)
    assert out.shape == (E, OUT_DIM), out.shape

    ref = edge_model_reference(raw, x, edge_index, edge_attr, u, batch)
    err = float(jnp.max(jnp.abs(out.astype(jnp.float32) - ref)))
    assert err < 5e-2, f"max abs err {err}"
    print("KERNEL_OK")
</pallas_src>

<mosaic_0001>
module attributes {stable_mosaic.version = 11 : i64} {
  func.func @_edge_model_kernel(%arg0: i32, %arg1: memref<256x44xbf16, #tpu.memory_space<vmem>>, %arg2: memref<44x128xbf16, #tpu.memory_space<vmem>>, %arg3: memref<1x128xf32, #tpu.memory_space<vmem>>, %arg4: memref<128x128xbf16, #tpu.memory_space<vmem>>, %arg5: memref<1x128xf32, #tpu.memory_space<vmem>>, %arg6: memref<256x128xbf16, #tpu.memory_space<vmem>>) attributes {dimension_semantics = [#tpu.dimension_semantics<parallel>], iteration_bounds = array<i64: 1>, scalar_prefetch = 0 : i64, scratch_operands = 0 : i64, tpu.core_type = #tpu.core_type<tc>, window_params = [{transform_indices = @transform_0, window_bounds = array<i64: 256, 44>}, {pipeline_mode = #tpu.pipeline_mode<synchronous>, transform_indices = @transform_1, window_bounds = array<i64: 44, 128>}, {pipeline_mode = #tpu.pipeline_mode<synchronous>, transform_indices = @transform_2, window_bounds = array<i64: 1, 128>}, {pipeline_mode = #tpu.pipeline_mode<synchronous>, transform_indices = @transform_3, window_bounds = array<i64: 128, 128>}, {pipeline_mode = #tpu.pipeline_mode<synchronous>, transform_indices = @transform_4, window_bounds = array<i64: 1, 128>}, {transform_indices = @transform_5, window_bounds = array<i64: 256, 128>}]} {
    %c0 = arith.constant 0 : index
    %c0_0 = arith.constant 0 : index
    %0 = vector.load %arg1[%c0, %c0_0] : memref<256x44xbf16, #tpu.memory_space<vmem>>, vector<256x44xbf16>
    %c0_1 = arith.constant 0 : index
    %c0_2 = arith.constant 0 : index
    %1 = vector.load %arg2[%c0_1, %c0_2] : memref<44x128xbf16, #tpu.memory_space<vmem>>, vector<44x128xbf16>
    %cst = arith.constant dense<0.000000e+00> : vector<256x128xf32>
    %2 = tpu.matmul %0, %1, %cst {dimension_numbers = #tpu.dot_dimension_numbers<[1], [0], [0], [1], [0, 0, 1, 1], [], []>} : vector<256x44xbf16>, vector<44x128xbf16>, vector<256x128xf32> -> vector<256x128xf32>
    %c0_3 = arith.constant 0 : index
    %c0_4 = arith.constant 0 : index
    %3 = vector.load %arg3[%c0_3, %c0_4] : memref<1x128xf32, #tpu.memory_space<vmem>>, vector<1x128xf32>
    %4 = vector.broadcast %3 : vector<1x128xf32> to vector<256x128xf32>
    %5 = arith.addf %2, %4 : vector<256x128xf32>
    %cst_5 = arith.constant 0.000000e+00 : f32
    %6 = vector.broadcast %cst_5 : f32 to vector<256x128xf32>
    %7 = arith.maximumf %5, %6 : vector<256x128xf32>
    %8 = arith.truncf %7 : vector<256x128xf32> to vector<256x128xbf16>
    %c0_6 = arith.constant 0 : index
    %c0_7 = arith.constant 0 : index
    %9 = vector.load %arg4[%c0_6, %c0_7] : memref<128x128xbf16, #tpu.memory_space<vmem>>, vector<128x128xbf16>
    %cst_8 = arith.constant dense<0.000000e+00> : vector<256x128xf32>
    %10 = tpu.matmul %8, %9, %cst_8 {dimension_numbers = #tpu.dot_dimension_numbers<[1], [0], [0], [1], [0, 0, 1, 1], [], []>} : vector<256x128xbf16>, vector<128x128xbf16>, vector<256x128xf32> -> vector<256x128xf32>
    %c0_9 = arith.constant 0 : index
    %c0_10 = arith.constant 0 : index
    %11 = vector.load %arg5[%c0_9, %c0_10] : memref<1x128xf32, #tpu.memory_space<vmem>>, vector<1x128xf32>
    %12 = vector.broadcast %11 : vector<1x128xf32> to vector<256x128xf32>
    %13 = arith.addf %10, %12 : vector<256x128xf32>
    %14 = arith.truncf %13 : vector<256x128xf32> to vector<256x128xbf16>
    %c0_11 = arith.constant 0 : index
    %c0_12 = arith.constant 0 : index
    %15 = vector.load %arg6[%c0_11, %c0_12] : memref<256x128xbf16, #tpu.memory_space<vmem>>, vector<256x128xbf16>
    tpu.vector_store %arg6[%c0_11, %c0_12], %14 {strides = array<i32>} : memref<256x128xbf16, #tpu.memory_space<vmem>>, vector<256x128xbf16>,
    return
  }
  func.func @transform_0(%arg0: i32) -> (i32, i32) {
    %c0_i32 = arith.constant 0 : i32
    %c0_i32_0 = arith.constant 0 : i32
    return %arg0, %c0_i32 : i32, i32
  }
  func.func @transform_1(%arg0: i32) -> (i32, i32) {
    %c0_i32 = arith.constant 0 : i32
    %c0_i32_0 = arith.constant 0 : i32
    %c0_i32_1 = arith.constant 0 : i32
    return %c0_i32, %c0_i32_0 : i32, i32
  }
  func.func @transform_2(%arg0: i32) -> (i32, i32) {
    %c0_i32 = arith.constant 0 : i32
    %c0_i32_0 = arith.constant 0 : i32
    %c0_i32_1 = arith.constant 0 : i32
    return %c0_i32, %c0_i32_0 : i32, i32
  }
  func.func @transform_3(%arg0: i32) -> (i32, i32) {
    %c0_i32 = arith.constant 0 : i32
    %c0_i32_0 = arith.constant 0 : i32
    %c0_i32_1 = arith.constant 0 : i32
    return %c0_i32, %c0_i32_0 : i32, i32
  }
  func.func @transform_4(%arg0: i32) -> (i32, i32) {
    %c0_i32 = arith.constant 0 : i32
    %c0_i32_0 = arith.constant 0 : i32
    %c0_i32_1 = arith.constant 0 : i32
    return %c0_i32, %c0_i32_0 : i32, i32
  }
  func.func @transform_5(%arg0: i32) -> (i32, i32) {
    %c0_i32 = arith.constant 0 : i32
    %c0_i32_0 = arith.constant 0 : i32
    return %arg0, %c0_i32 : i32, i32
  }
}

</mosaic_0001>

<bundles_post_ra>
// kernel: tpu_custom_call.1
= control target key start
LH: loop header
LB: loop body
LE: loop exit
PB: predicated region body
PF: predicated region fallthrough
CT: control target
= control target key end

     0   :  { %vm210_vm0 = vcmask 1045504   ;;  %s1088_s0 = inlined_call_operand.vmem [shape: bf16[256,44], index: 0, kind: input, shape index: {}]   ;;  %s1089_s1 = inlined_call_operand.vmem [shape: bf16[44,128], index: 1, kind: input, shape index: {}]   ;;  %s1090_s2 = inlined_call_operand.vmem [shape: f32[1,128], index: 2, kind: input, shape index: {}]   ;;  %s1091_s3 = inlined_call_operand.vmem [shape: bf16[128,128], index: 3, kind: input, shape index: {}]   ;;  %s1092_s4 = inlined_call_operand.vmem [shape: f32[1,128], index: 4, kind: input, shape index: {}]   ;;  %s1093_s5 = inlined_call_operand.hbm [shape: bf16[256,128], index: 5, kind: output, shape index: {}]  }
   0x1   :  { %v664_v0 = vld [vmem:[%s1089_s1 + $0x10] sm:$0xf]  ;;  %v732_v1 = vld [vmem:[%s1089_s1 + $0x10] sm:$0x30] }
   0x2   :  { %v665_v2 = vor.u32 %v732_v1, %v664_v0 }
   0x4   :  { %v212_v3 = vsel %vm210_vm0, %v665_v2, 0 }
   0x5   :  { %10 = vsyncpa [#allocation3], 0  ;;  %219 = vmatpush.bf16.msra.mxu0 %v212_v3  ;;  %v731_v4 = vld [vmem:[%s1089_s1 + $0x8] sm:$0xff]  ;;  %836 = vmatpush.bf16.msra.mxu3 %v212_v3  ;;  %v730_v5 = vld [vmem:[%s1089_s1] sm:$0xff]  ;;  %vm161_vm1 = vcmask 359424   ;;  %s578_s26 = sshll.u32 %s1093_s5, 4  ;;  %s579_s26 = int_to_ptr.hbm [resolvable:$true] %s578_s26 }
   0x6   :  { %v714_v6 = vld [vmem:[%s1088_s0] sm:$0xff]  ;;  %v715_v7 = vld [vmem:[%s1088_s0 + $0x8] sm:$0xff]  ;;  %v716_v8 = vld [vmem:[%s1088_s0 + $0x10] sm:$0xff]  ;;  %s879_s27 = smov 64   ;;  %s880_s28 = smov 4  }
   0x7   :  { %v717_v9 = vld [vmem:[%s1088_s0 + $0x18] sm:$0xff]  ;;  %v718_v10 = vld [vmem:[%s1088_s0 + $0x20] sm:$0xff]  ;;  %v719_v12 = vld [vmem:[%s1088_s0 + $0x28] sm:$0xff] }
   0x8   :  { %v740_v11 = vld [vmem:[%s1091_s3 + $0x38] sm:$0xff]  ;;  %v739_v13 = vld [vmem:[%s1091_s3 + $0x30] sm:$0xff]  ;;  %v738_v14 = vld [vmem:[%s1091_s3 + $0x28] sm:$0xff] }
   0x9   :  { %220 = vmatpush.bf16.msra.mxu0 %v731_v4  ;;  %837 = vmatpush.bf16.msra.mxu3 %v731_v4  ;;  %v737_v15 = vld [vmem:[%s1091_s3 + $0x20] sm:$0xff]  ;;  %v736_v16 = vld [vmem:[%s1091_s3 + $0x18] sm:$0xff]  ;;  %v720_v17 = vld [vmem:[%s1088_s0 + $0x30] sm:$0xff] }
   0xa   :  { %419 = vmatpush.bf16.msra.mxu1 %v740_v11  ;;  %839 = vmatpush.bf16.msra.mxu2 %v740_v11  ;;  %v735_v18 = vld [vmem:[%s1091_s3 + $0x10] sm:$0xff]  ;;  %v723_v19 = vld [vmem:[%s1088_s0 + $0x48] sm:$0xff]  ;;  %v733_v21 = vld [vmem:[%s1091_s3] sm:$0xff] }
   0xb   :  { %v734_v20 = vld [vmem:[%s1091_s3 + $0x8] sm:$0xff]  ;;  %v721_v22 = vld [vmem:[%s1088_s0 + $0x38] sm:$0xff]  ;;  %v724_v23 = vld [vmem:[%s1088_s0 + $0x50] sm:$0xff] }
   0xc   :  { %v722_v24 = vld [vmem:[%s1088_s0 + $0x40] sm:$0xff]  ;;  %v725_v27 = vld [vmem:[%s1088_s0 + $0x58] sm:$0xff]  ;;  %v727_v43 = vld [vmem:[%s1088_s0 + $0x68] sm:$0xff] }
   0xd   :  { %221 = vmatpush.bf16.msra.mxu0 %v730_v5  ;;  %838 = vmatpush.bf16.msra.mxu3 %v730_v5  ;;  %v993_v26 = vld [vmem:[%s1090_s2] ss:$0 sm:$0xff]  ;;  %v728_v51 = vld [vmem:[%s1088_s0 + $0x70] sm:$0xff]  ;;  %v729_v59 = vld [vmem:[%s1088_s0 + $0x78] sm:$0xff] }
   0xe   :  { %420 = vmatpush.bf16.msra.mxu1 %v739_v13  ;;  %840 = vmatpush.bf16.msra.mxu2 %v739_v13  ;;  %v726_v35 = vld [vmem:[%s1088_s0 + $0x60] sm:$0xff] }
  0x10   :  { %666 = vmatmul.msk.bf16.vlgmr.msra.gmra.mxu0 %vm161_vm1, %v714_v6  ;;  %675 = vmatmul.msk.bf16.vlgmr.msra.gmra.mxu3 %vm161_vm1, %v723_v19 }
  0x12   :  { %421 = vmatpush.bf16.msra.mxu1 %v738_v14  ;;  %841 = vmatpush.bf16.msra.mxu2 %v738_v14 }
  0x16   :  { %422 = vmatpush.bf16.msra.mxu1 %v737_v15  ;;  %842 = vmatpush.bf16.msra.mxu2 %v737_v15 }
  0x1a   :  { %423 = vmatpush.bf16.msra.mxu1 %v736_v16  ;;  %843 = vmatpush.bf16.msra.mxu2 %v736_v16 }
  0x1e   :  { %424 = vmatpush.bf16.msra.mxu1 %v735_v18  ;;  %844 = vmatpush.bf16.msra.mxu2 %v735_v18 }
  0x20   :  { %667 = vmatmul.msk.bf16.gmra.mxu0 %vm161_vm1, %v715_v7  ;;  %676 = vmatmul.msk.bf16.gmra.mxu3 %vm161_vm1, %v724_v23 }
  0x22   :  { %425 = vmatpush.bf16.msra.mxu1 %v734_v20  ;;  %845 = vmatpush.bf16.msra.mxu2 %v734_v20 }
  0x26   :  { %426 = vmatpush.bf16.msra.mxu1 %v733_v21  ;;  %846 = vmatpush.bf16.msra.mxu2 %v733_v21 }
  0x30   :  { %668 = vmatmul.msk.bf16.gmra.mxu0 %vm161_vm1, %v716_v8  ;;  %677 = vmatmul.msk.bf16.gmra.mxu3 %vm161_vm1, %v725_v27 }
  0x40   :  { %669 = vmatmul.msk.bf16.gmra.mxu0 %vm161_vm1, %v717_v9  ;;  %678 = vmatmul.msk.bf16.gmra.mxu3 %vm161_vm1, %v726_v35 }
  0x50   :  { %670 = vmatmul.msk.bf16.gmra.mxu0 %vm161_vm1, %v718_v10  ;;  %679 = vmatmul.msk.bf16.gmra.mxu3 %vm161_vm1, %v727_v43 }
  0x60   :  { %671 = vmatmul.msk.bf16.gmra.mxu0 %vm161_vm1, %v719_v12  ;;  %680 = vmatmul.msk.bf16.gmra.mxu3 %vm161_vm1, %v728_v51 }
  0x70   :  { %672 = vmatmul.msk.bf16.gmra.mxu0 %vm161_vm1, %v720_v17  ;;  %681 = vmatmul.msk.bf16.gmra.mxu3 %vm161_vm1, %v729_v59 }
  0x80   :  { %673 = vmatmul.msk.bf16.gmra.mxu0 %vm161_vm1, %v721_v22 }
  0x8d   :  { %v223_v25 = vpop.f32.mrf.mxu0 }
  0x8e   :  { %v224_v28 = vadd.f32 %v993_v26, %v223_v25 }
  0x90   :  { %674 = vmatmul.msk.bf16.gmra.mxu0 %vm161_vm1, %v722_v24  ;;  %v303_v31 = vmax.f32 %v224_v28, 0.0 }
  0x93   :  { %v268_v17 = vpop.f32.mrf.mxu3 }
  0x95   :  { %v225_v29 = vpop.f32.mrf.mxu0 }
  0x96   :  { %v226_v30 = vadd.f32 %v993_v26, %v225_v29 }
  0x98   :  { %v304_v32 = vmax.f32 %v226_v30, 0.0 }
  0x9a   :  { %v335_v33 = vpack.c.bf16 %v304_v32, %v303_v31 }
  0x9b   :  { %v270_v21 = vpop.f32.mrf.mxu3 }
  0x9c   :  { %427 = vmatmul.bf16.vlgmr.msra.gmra.mxu1 %v335_v33 }
  0x9d   :  { %v228_v34 = vpop.f32.mrf.mxu0 }
  0x9e   :  { %v229_v36 = vadd.f32 %v993_v26, %v228_v34 }
  0xa0   :  { %v305_v39 = vmax.f32 %v229_v36, 0.0  ;;  %v1037_v36 = vld [vmem:[%s1092_s4] ss:$0 sm:$0xff]  ;;  %s878_s4 = smov [#allocation2]  }
  0xa1   :  { %s576_s23 = sshll.u32 %s878_s4, 4  ;;  %s577_s23 = int_to_ptr.vmem [resolvable:$true] %s576_s23 }
  0xa3   :  { %v273_v27 = vpop.f32.mrf.mxu3 }
  0xa5   :  { %v230_v37 = vpop.f32.mrf.mxu0 }
  0xa6   :  { %v231_v38 = vadd.f32 %v993_v26, %v230_v37 }
  0xa8   :  { %v306_v40 = vmax.f32 %v231_v38, 0.0  ;;  %v269_v38 = vadd.f32 %v993_v26, %v268_v17 }
  0xaa   :  { %v336_v41 = vpack.c.bf16 %v306_v40, %v305_v39  ;;  %v271_v40 = vadd.f32 %v993_v26, %v270_v21 }
  0xab   :  { %v275_v35 = vpop.f32.mrf.mxu3 }
  0xac   :  { %432 = vmatmul.bf16.gmra.mxu1 %v336_v41 }
  0xad   :  { %v233_v42 = vpop.f32.mrf.mxu0 }
  0xae   :  { %v234_v44 = vadd.f32 %v993_v26, %v233_v42 }
  0xb0   :  { %v307_v47 = vmax.f32 %v234_v44, 0.0  ;;  %v321_v44 = vmax.f32 %v269_v38, 0.0 }
  0xb3   :  { %v278_v43 = vpop.f32.mrf.mxu3 }
  0xb5   :  { %v235_v45 = vpop.f32.mrf.mxu0 }
  0xb6   :  { %v236_v46 = vadd.f32 %v993_v26, %v235_v45  ;;  %v322_v45 = vmax.f32 %v271_v40, 0.0 }
  0xb8   :  { %v308_v48 = vmax.f32 %v236_v46, 0.0 }
  0xba   :  { %v337_v49 = vpack.c.bf16 %v308_v48, %v307_v47  ;;  %v344_v47 = vpack.c.bf16 %v322_v45, %v321_v44 }
  0xbb   :  { %v280_v48 = vpop.f32.mrf.mxu3 }
  0xbc   :  { %437 = vmatmul.bf16.gmra.mxu1 %v337_v49 }
  0xbd   :  { %v238_v50 = vpop.f32.mrf.mxu0 }
  0xbe   :  { %v239_v52 = vadd.f32 %v993_v26, %v238_v50  ;;  %v274_v50 = vadd.f32 %v993_v26, %v273_v27 }
  0xc0   :  { %v309_v55 = vmax.f32 %v239_v52, 0.0  ;;  %v276_v52 = vadd.f32 %v993_v26, %v275_v35 }
  0xc5   :  { %v240_v53 = vpop.f32.mrf.mxu0 }
  0xc6   :  { %v241_v54 = vadd.f32 %v993_v26, %v240_v53 }
  0xc8   :  { %v310_v56 = vmax.f32 %v241_v54, 0.0 }
  0xca   :  { %v338_v57 = vpack.c.bf16 %v310_v56, %v309_v55  ;;  %v323_v55 = vmax.f32 %v274_v50, 0.0  ;;  %v324_v56 = vmax.f32 %v276_v52, 0.0 }
  0xcc   :  { %442 = vmatmul.bf16.gmra.mxu1 %v338_v57  ;;  %v345_v59 = vpack.c.bf16 %v324_v56, %v323_v55 }
  0xcd   :  { %v243_v58 = vpop.f32.mrf.mxu0 }
  0xce   :  { %v244_v60 = vadd.f32 %v993_v26, %v243_v58  ;;  %v283_v58 = vpop.f32.mrf.mxu3 }
  0xd0   :  { %v311_v63 = vmax.f32 %v244_v60, 0.0 }
  0xd5   :  { %v245_v61 = vpop.f32.mrf.mxu0 }
  0xd6   :  { %v246_v62 = vadd.f32 %v993_v26, %v245_v61  ;;  %v279_v61 = vadd.f32 %v993_v26, %v278_v43 }
  0xd8   :  { %v312_v0 = vmax.f32 %v246_v62, 0.0 }
  0xda   :  { %v339_v1 = vpack.c.bf16 %v312_v0, %v311_v63  ;;  %v281_v63 = vadd.f32 %v993_v26, %v280_v48 }
  0xdc   :  { %447 = vmatmul.bf16.gmra.mxu1 %v339_v1  ;;  %v285_v1 = vpop.f32.mrf.mxu3 }
  0xdd   :  { %v248_v2 = vpop.f32.mrf.mxu0 }
  0xde   :  { %v249_v3 = vadd.f32 %v993_v26, %v248_v2 }
  0xe0   :  { %v313_v6 = vmax.f32 %v249_v3, 0.0  ;;  %v325_v3 = vmax.f32 %v279_v61, 0.0 }
  0xe5   :  { %v250_v4 = vpop.f32.mrf.mxu0 }
  0xe6   :  { %v251_v5 = vadd.f32 %v993_v26, %v250_v4  ;;  %v326_v4 = vmax.f32 %v281_v63, 0.0 }
  0xe8   :  { %v314_v7 = vmax.f32 %v251_v5, 0.0 }
  0xea   :  { %v340_v8 = vpack.c.bf16 %v314_v7, %v313_v6  ;;  %v346_v6 = vpack.c.bf16 %v326_v4, %v325_v3  ;;  %v288_v7 = vpop.f32.mrf.mxu3 }
  0xeb   :  { %v289_v21 = vadd.f32 %v993_v26, %v288_v7 }
  0xec   :  { %452 = vmatmul.bf16.gmra.mxu1 %v340_v8 }
  0xed   :  { %v253_v9 = vpop.f32.mrf.mxu0  ;;  %v329_v27 = vmax.f32 %v289_v21, 0.0 }
  0xee   :  { %v254_v10 = vadd.f32 %v993_v26, %v253_v9  ;;  %v284_v9 = vadd.f32 %v993_v26, %v283_v58 }
  0xf0   :  { %v315_v13 = vmax.f32 %v254_v10, 0.0 }
  0xf5   :  { %v255_v11 = vpop.f32.mrf.mxu0 }
  0xf6   :  { %v256_v12 = vadd.f32 %v993_v26, %v255_v11  ;;  %v286_v11 = vadd.f32 %v993_v26, %v285_v1 }
  0xf8   :  { %v316_v14 = vmax.f32 %v256_v12, 0.0 }
  0xfa   :  { %v341_v15 = vpack.c.bf16 %v316_v14, %v315_v13  ;;  %v327_v14 = vmax.f32 %v284_v9, 0.0 }
  0xfc   :  { %457 = vmatmul.bf16.gmra.mxu1 %v341_v15  ;;  %v328_v15 = vmax.f32 %v286_v11, 0.0 }
  0xfd   :  { %v258_v16 = vpop.f32.mrf.mxu0 }
  0xfe   :  { %v259_v18 = vadd.f32 %v993_v26, %v258_v16  ;;  %v290_v16 = vpop.f32.mrf.mxu3 }
 0x100   :  { %v317_v22 = vmax.f32 %v259_v18, 0.0  ;;  %v347_v18 = vpack.c.bf16 %v328_v15, %v327_v14 }
 0x105   :  { %v260_v19 = vpop.f32.mrf.mxu0 }
 0x106   :  { %v261_v20 = vadd.f32 %v993_v26, %v260_v19 }
 0x108   :  { %v318_v23 = vmax.f32 %v261_v20, 0.0  ;;  %v293_v20 = vpop.f32.mrf.mxu3 }
 0x10a   :  { %v342_v24 = vpack.c.bf16 %v318_v23, %v317_v22  ;;  %v291_v23 = vadd.f32 %v993_v26, %v290_v16 }
 0x10c   :  { %462 = vmatmul.bf16.gmra.mxu1 %v342_v24 }
 0x10d   :  { %v263_v25 = vpop.f32.mrf.mxu0 }
 0x10e   :  { %v264_v28 = vadd.f32 %v993_v26, %v263_v25 }
 0x110   :  { %v319_v31 = vmax.f32 %v264_v28, 0.0  ;;  %v330_v28 = vmax.f32 %v291_v23, 0.0 }
 0x115   :  { %v265_v29 = vpop.f32.mrf.mxu0 }
 0x116   :  { %v266_v30 = vadd.f32 %v993_v26, %v265_v29 }
 0x118   :  { %v320_v32 = vmax.f32 %v266_v30, 0.0  ;;  %v348_v30 = vpack.c.bf16 %v330_v28, %v329_v27 }
 0x119   :  { %v428_v33 = vpop.f32.mrf.mxu1 }
 0x11a   :  { %v343_v34 = vpack.c.bf16 %v320_v32, %v319_v31  ;;  %v429_v39 = vadd.f32 %v1037_v36, %v428_v33  ;;  %v295_v31 = vpop.f32.mrf.mxu3  ;;  %v294_v33 = vadd.f32 %v993_v26, %v293_v20 }
 0x11b   :  { %v296_v35 = vadd.f32 %v993_v26, %v295_v31 }
 0x11c   :  { %467 = vmatmul.bf16.vlgmr.msra.gmra.mxu2 %v343_v34  ;;  %v331_v40 = vmax.f32 %v294_v33, 0.0 }
 0x121   :  { %v430_v37 = vpop.f32.mrf.mxu1 }
 0x122   :  { %v431_v41 = vadd.f32 %v1037_v36, %v430_v37 }
 0x124   :  { %v744_v42 = vpack.c.bf16 %v431_v41, %v429_v39  ;;  %v298_v39 = vpop.f32.mrf.mxu3  ;;  %v332_v41 = vmax.f32 %v296_v35, 0.0 }
 0x126   :  { %745 = vst [vmem:[#allocation2] sm:$0xff] %v744_v42   ;;  %v349_v43 = vpack.c.bf16 %v332_v41, %v331_v40 }
 0x129   :  { %v433_v46 = vpop.f32.mrf.mxu1 }
 0x12a   :  { %v434_v51 = vadd.f32 %v1037_v36, %v433_v46  ;;  %v299_v46 = vadd.f32 %v993_v26, %v298_v39 }
 0x12c   :  { %472 = vmatmul.bf16.gmra.mxu2 %v344_v47  ;;  %v300_v44 = vpop.f32.mrf.mxu3 }
 0x12d   :  { %v301_v48 = vadd.f32 %v993_v26, %v300_v44 }
 0x12f   :  { %v334_v52 = vmax.f32 %v301_v48, 0.0 }
 0x131   :  { %v435_v49 = vpop.f32.mrf.mxu1 }
 0x132   :  { %v436_v53 = vadd.f32 %v1037_v36, %v435_v49 }
 0x134   :  { %v749_v54 = vpack.c.bf16 %v436_v53, %v434_v51  ;;  %v333_v51 = vmax.f32 %v299_v46, 0.0 }
 0x136   :  { %821 = vst [vmem:[#allocation2 + $0x8] sm:$0xff] %v749_v54   ;;  %v350_v54 = vpack.c.bf16 %v334_v52, %v333_v51 }
 0x139   :  { %v438_v57 = vpop.f32.mrf.mxu1 }
 0x13a   :  { %v439_v62 = vadd.f32 %v1037_v36, %v438_v57 }
 0x13c   :  { %477 = vmatmul.bf16.gmra.mxu2 %v345_v59 }
 0x141   :  { %v440_v60 = vpop.f32.mrf.mxu1 }
 0x142   :  { %v441_v0 = vadd.f32 %v1037_v36, %v440_v60 }
 0x144   :  { %v754_v2 = vpack.c.bf16 %v441_v0, %v439_v62 }
 0x146   :  { %822 = vst [vmem:[#allocation2 + $0x10] sm:$0xff] %v754_v2  }
 0x149   :  { %v443_v5 = vpop.f32.mrf.mxu1 }
 0x14a   :  { %v444_v10 = vadd.f32 %v1037_v36, %v443_v5 }
 0x14c   :  { %482 = vmatmul.bf16.gmra.mxu2 %v346_v6 }
 0x151   :  { %v445_v8 = vpop.f32.mrf.mxu1 }
 0x152   :  { %v446_v12 = vadd.f32 %v1037_v36, %v445_v8 }
 0x154   :  { %v759_v13 = vpack.c.bf16 %v446_v12, %v444_v10 }
 0x156   :  { %823 = vst [vmem:[#allocation2 + $0x18] sm:$0xff] %v759_v13  }
 0x159   :  { %v448_v17 = vpop.f32.mrf.mxu1 }
 0x15a   :  { %v449_v22 = vadd.f32 %v1037_v36, %v448_v17 }
 0x15c   :  { %487 = vmatmul.bf16.gmra.mxu2 %v347_v18 }
 0x161   :  { %v450_v19 = vpop.f32.mrf.mxu1 }
 0x162   :  { %v451_v24 = vadd.f32 %v1037_v36, %v450_v19 }
 0x164   :  { %v764_v25 = vpack.c.bf16 %v451_v24, %v449_v22 }
 0x166   :  { %824 = vst [vmem:[#allocation2 + $0x20] sm:$0xff] %v764_v25  }
 0x169   :  { %v453_v29 = vpop.f32.mrf.mxu1 }
 0x16a   :  { %v454_v34 = vadd.f32 %v1037_v36, %v453_v29 }
 0x16c   :  { %492 = vmatmul.bf16.gmra.mxu2 %v348_v30 }
 0x171   :  { %v455_v32 = vpop.f32.mrf.mxu1 }
 0x172   :  { %v456_v37 = vadd.f32 %v1037_v36, %v455_v32 }
 0x174   :  { %v769_v38 = vpack.c.bf16 %v456_v37, %v454_v34 }
 0x176   :  { %825 = vst [vmem:[#allocation2 + $0x28] sm:$0xff] %v769_v38  }
 0x179   :  { %v458_v42 = vpop.f32.mrf.mxu1 }
 0x17a   :  { %v459_v47 = vadd.f32 %v1037_v36, %v458_v42 }
 0x17c   :  { %497 = vmatmul.bf16.gmra.mxu2 %v349_v43 }
 0x181   :  { %v460_v45 = vpop.f32.mrf.mxu1 }
 0x182   :  { %v461_v49 = vadd.f32 %v1037_v36, %v460_v45 }
 0x184   :  { %v774_v50 = vpack.c.bf16 %v461_v49, %v459_v47 }
 0x186   :  { %826 = vst [vmem:[#allocation2 + $0x30] sm:$0xff] %v774_v50  }
 0x189   :  { %v463_v53 = vpop.f32.mrf.mxu1 }
 0x18a   :  { %v464_v56 = vadd.f32 %v1037_v36, %v463_v53 }
 0x18c   :  { %502 = vmatmul.bf16.gmra.mxu2 %v350_v54 }
 0x191   :  { %v465_v55 = vpop.f32.mrf.mxu1 }
 0x192   :  { %v466_v57 = vadd.f32 %v1037_v36, %v465_v55 }
 0x194   :  { %v779_v58 = vpack.c.bf16 %v466_v57, %v464_v56 }
 0x196   :  { %827 = vst [vmem:[#allocation2 + $0x38] sm:$0xff] %v779_v58  }
 0x19f   :  { %v468_v59 = vpop.f32.mrf.mxu2 }
 0x1a0   :  { %v469_v26 = vadd.f32 %v1037_v36, %v468_v59 }
 0x1a7   :  { %v470_v60 = vpop.f32.mrf.mxu2 }
 0x1a8   :  { %v471_v61 = vadd.f32 %v1037_v36, %v470_v60 }
 0x1aa   :  { %v784_v62 = vpack.c.bf16 %v471_v61, %v469_v26 }
 0x1ac   :  { %828 = vst [vmem:[#allocation2 + $0x40] sm:$0xff] %v784_v62  }
 0x1af   :  { %v473_v63 = vpop.f32.mrf.mxu2 }
 0x1b0   :  { %v474_v1 = vadd.f32 %v1037_v36, %v473_v63 }
 0x1b7   :  { %v475_v0 = vpop.f32.mrf.mxu2 }
 0x1b8   :  { %v476_v2 = vadd.f32 %v1037_v36, %v475_v0 }
 0x1ba   :  { %v789_v3 = vpack.c.bf16 %v476_v2, %v474_v1 }
 0x1bc   :  { %829 = vst [vmem:[#allocation2 + $0x48] sm:$0xff] %v789_v3  }
 0x1bf   :  { %v478_v4 = vpop.f32.mrf.mxu2 }
 0x1c0   :  { %v479_v6 = vadd.f32 %v1037_v36, %v478_v4 }
 0x1c7   :  { %v480_v5 = vpop.f32.mrf.mxu2 }
 0x1c8   :  { %v481_v7 = vadd.f32 %v1037_v36, %v480_v5 }
 0x1ca   :  { %v794_v8 = vpack.c.bf16 %v481_v7, %v479_v6 }
 0x1cc   :  { %830 = vst [vmem:[#allocation2 + $0x50] sm:$0xff] %v794_v8  }
 0x1cf   :  { %v483_v9 = vpop.f32.mrf.mxu2 }
 0x1d0   :  { %v484_v11 = vadd.f32 %v1037_v36, %v483_v9 }
 0x1d7   :  { %v485_v10 = vpop.f32.mrf.mxu2 }
 0x1d8   :  { %v486_v12 = vadd.f32 %v1037_v36, %v485_v10 }
 0x1da   :  { %v799_v13 = vpack.c.bf16 %v486_v12, %v484_v11 }
 0x1dc   :  { %831 = vst [vmem:[#allocation2 + $0x58] sm:$0xff] %v799_v13  }
 0x1df   :  { %v488_v14 = vpop.f32.mrf.mxu2 }
 0x1e0   :  { %v489_v16 = vadd.f32 %v1037_v36, %v488_v14 }
 0x1e7   :  { %v490_v15 = vpop.f32.mrf.mxu2 }
 0x1e8   :  { %v491_v17 = vadd.f32 %v1037_v36, %v490_v15 }
 0x1ea   :  { %v804_v18 = vpack.c.bf16 %v491_v17, %v489_v16 }
 0x1ec   :  { %832 = vst [vmem:[#allocation2 + $0x60] sm:$0xff] %v804_v18  }
 0x1ef   :  { %v493_v19 = vpop.f32.mrf.mxu2 }
 0x1f0   :  { %v494_v21 = vadd.f32 %v1037_v36, %v493_v19 }
 0x1f7   :  { %v495_v20 = vpop.f32.mrf.mxu2 }
 0x1f8   :  { %v496_v22 = vadd.f32 %v1037_v36, %v495_v20 }
 0x1fa   :  { %v809_v23 = vpack.c.bf16 %v496_v22, %v494_v21 }
 0x1fc   :  { %833 = vst [vmem:[#allocation2 + $0x68] sm:$0xff] %v809_v23  }
 0x1ff   :  { %v498_v24 = vpop.f32.mrf.mxu2 }
 0x200   :  { %v499_v27 = vadd.f32 %v1037_v36, %v498_v24 }
 0x207   :  { %v500_v25 = vpop.f32.mrf.mxu2 }
 0x208   :  { %v501_v28 = vadd.f32 %v1037_v36, %v500_v25 }
 0x20a   :  { %v814_v29 = vpack.c.bf16 %v501_v28, %v499_v27 }
 0x20c   :  { %834 = vst [vmem:[#allocation2 + $0x70] sm:$0xff] %v814_v29  }
 0x20f   :  { %v503_v30 = vpop.f32.mrf.mxu2 }
 0x210   :  { %v504_v32 = vadd.f32 %v1037_v36, %v503_v30 }
 0x217   :  { %v505_v31 = vpop.f32.mrf.mxu2 }
 0x218   :  { %v506_v33 = vadd.f32 %v1037_v36, %v505_v31 }
 0x21a   :  { %v819_v34 = vpack.c.bf16 %v506_v33, %v504_v32 }
 0x21c   :  { %835 = vst [vmem:[#allocation2 + $0x78] sm:$0xff] %v819_v34  }
 0x21d   :  { %584 = dma.vmem_to_hbm [thread:$0]  %s577_s23, 2048, %s579_s26, [#allocation3], %s879_s27, %s879_s27, %s880_s28  }
 0x21e   :  { %876 = dma.done.wait [#allocation3], 2048  }
 0x21f   :  { %877 = vsyncadd [#allocation3], 4294965248 }
 0x220   :  { %589 = vsyncpa [#allocation3], 1 }

</bundles_post_ra>
